<compile_context>
chip_gen: v7x
topology: tpu7x:2x2x1
jax: 0.10.0
libtpu: 0.0.40
codegen_flags: <defaults>
</compile_context>

<pallas_src>
import functools

import jax
import jax.numpy as jnp
from jax.experimental import pallas as pl
from jax.experimental.pallas import tpu as pltpu

_LANE = 128
_TB = 128                     # batch tile for the gridded (large-batch) path
_GRID_BATCH_THRESHOLD = 256   # below this, single-shot (no grid) is cheaper


def _gradnet_m_kernel(x_ref, wspT_ref, walpha_ref, bsp_ref, bias_ref, out_ref):
    # matmul 1, MXU-native K-first RHS layout; softplus(beta_i)*W_i and
    # softplus(beta_i)*b_i are pre-folded into wspT / bsp at init time.
    z = jnp.dot(x_ref[...], wspT_ref[...],
                preferred_element_type=jnp.float32)          # (B, M*E)
    h = jnp.tanh(z + bsp_ref[...])                           # (B, M*E)
    # matmul 2: alpha_i*W_i pre-folded into walpha; the K-reduction over the
    # stacked M*E axis performs the sum over modules.
    y = jnp.dot(h, walpha_ref[...],
                preferred_element_type=jnp.float32)          # (B, P)
    out_ref[...] = y + bias_ref[...]


def prepare_gradnet_m_params(alpha, beta, W, b, bias):
    """One-time parameter prep.  W: (M, E, in_dim); b: (M, E);
    alpha, beta: (M,); bias: (in_dim,)."""
    M, E, in_dim = W.shape
    ME = M * E
    P = pl.cdiv(in_dim, _LANE) * _LANE
    pad = P - in_dim

    # numerically stable softplus(beta), computed once
    sp = jnp.maximum(beta, 0.0) + jnp.log1p(jnp.exp(-jnp.abs(beta)))
    sp = sp.astype(jnp.float32)

    W32 = W.astype(jnp.float32)
    W_sp = (W32 * sp[:, None, None]).reshape(ME, in_dim)              # (ME, in)
    W_alpha = (W32 * alpha.astype(jnp.float32)[:, None, None]
               ).reshape(ME, in_dim)                                  # (ME, in)
    bias32 = bias.astype(jnp.float32)
    if pad:
        W_sp = jnp.pad(W_sp, ((0, 0), (0, pad)))
        W_alpha = jnp.pad(W_alpha, ((0, 0), (0, pad)))
        bias32 = jnp.pad(bias32, (0, pad))

    params = {
        "w_sp_t": jnp.asarray(W_sp.T),                                # (P, ME)
        "w_alpha": jnp.asarray(W_alpha),                              # (ME, P)
        "b_sp": (b.astype(jnp.float32) * sp[:, None]).reshape(1, ME), # (1, ME)
        "bias_row": bias32.reshape(1, P),                             # (1, P)
        "in_dim": int(in_dim),
    }
    return params


@functools.partial(jax.jit, static_argnames=("in_dim",))
def _forward_impl(x, w_sp_t, w_alpha, b_sp, bias_row, *, in_dim):
    B = x.shape[0]
    P, ME = w_sp_t.shape

    x32 = x.astype(jnp.float32)
    if P != in_dim:
        x32 = jnp.pad(x32, ((0, 0), (0, P - in_dim)))

    if B < _GRID_BATCH_THRESHOLD:
        # Latency-bound regime: single shot, everything VMEM-resident.
        vmem = pl.BlockSpec(memory_space=pltpu.MemorySpace.VMEM)
        out_p = pl.pallas_call(
            _gradnet_m_kernel,
            out_shape=jax.ShapeDtypeStruct((B, P), jnp.float32),
            in_specs=[vmem] * 5,
            out_specs=vmem,
        )(x32, w_sp_t, w_alpha, b_sp, bias_row)
    else:
        # Large batch: tile the batch axis, mark it parallel (v7x 2 TCs),
        # keep the weight/row inputs resident via constant index_maps.
        Bp = pl.cdiv(B, _TB) * _TB
        if Bp != B:
            x32 = jnp.pad(x32, ((0, Bp - B), (0, 0)))
        out_p = pl.pallas_call(
            _gradnet_m_kernel,
            out_shape=jax.ShapeDtypeStruct((Bp, P), jnp.float32),
            grid=(Bp // _TB,),
            in_specs=[
                pl.BlockSpec((_TB, P), lambda i: (i, 0)),
                pl.BlockSpec((P, ME), lambda i: (0, 0)),
                pl.BlockSpec((ME, P), lambda i: (0, 0)),
                pl.BlockSpec((1, ME), lambda i: (0, 0)),
                pl.BlockSpec((1, P), lambda i: (0, 0)),
            ],
            out_specs=pl.BlockSpec((_TB, P), lambda i: (i, 0)),
            compiler_params=pltpu.CompilerParams(
                dimension_semantics=("parallel",)),
        )(x32, w_sp_t, w_alpha, b_sp, bias_row)
        out_p = out_p[:B]

    return out_p[:, :in_dim]


def gradnet_m_forward(x, params):
    """x: (B, in_dim) -> (B, in_dim) float32, using prepared params."""
    return _forward_impl(x, params["w_sp_t"], params["w_alpha"],
                         params["b_sp"], params["bias_row"],
                         in_dim=params["in_dim"])


def gradnet_m_reference(x, alpha, beta, W, b, bias):
    out = jnp.zeros_like(x)
    for i in range(W.shape[0]):
        z = x @ W[i].T + b[i]
        h = jnp.tanh(z * jax.nn.softplus(beta[i]))
        out = out + alpha[i] * (h @ W[i])
    return out + bias


if __name__ == "__main__":
    num_modules, in_dim, embed_dim, batch = 3, 32, 64, 8

    key = jax.random.PRNGKey(0)
    k_x, k_w, k_b, k_beta, k_alpha, k_bias, k_x2 = jax.random.split(key, 7)

    kW = jnp.sqrt(1.0 / in_dim)        # init scale for W, b (fan_in = in_dim)
    kB = jnp.sqrt(1.0 / embed_dim)     # init scale for final bias

    x = jax.random.normal(k_x, (batch, in_dim), dtype=jnp.float32)
    W = jax.random.uniform(k_w, (num_modules, embed_dim, in_dim),
                           minval=-kW, maxval=kW, dtype=jnp.float32)
    b = jax.random.uniform(k_b, (num_modules, embed_dim),
                           minval=-kW, maxval=kW, dtype=jnp.float32)
    beta = jax.random.uniform(k_beta, (num_modules,), dtype=jnp.float32)
    alpha = jax.random.normal(k_alpha, (num_modules,), dtype=jnp.float32)
    bias = jax.random.uniform(k_bias, (in_dim,),
                              minval=-kB, maxval=kB, dtype=jnp.float32)

    params = prepare_gradnet_m_params(alpha, beta, W, b, bias)

    # small batch: single-shot path
    out = jax.block_until_ready(gradnet_m_forward(x, params))
    ref = gradnet_m_reference(x, alpha, beta, W, b, bias)
    assert out.shape == (batch, in_dim)
    assert jnp.allclose(out, ref, atol=1e-5, rtol=1e-5), "mismatch (small B)"

    # large batch: exercises the gridded, batch-parallel path
    big_b = 512
    x_big = jax.random.normal(k_x2, (big_b, in_dim), dtype=jnp.float32)
    out_big = jax.block_until_ready(gradnet_m_forward(x_big, params))
    ref_big = gradnet_m_reference(x_big, alpha, beta, W, b, bias)
    assert out_big.shape == (big_b, in_dim)
    assert jnp.allclose(out_big, ref_big, atol=1e-5, rtol=1e-5), \
        "mismatch (large B)"

    print("KERNEL_OK")
</pallas_src>

<mosaic_0001>
module attributes {stable_mosaic.version = 11 : i64} {
  func.func @_gradnet_m_kernel(%arg0: memref<8x128xf32, #tpu.memory_space<vmem>>, %arg1: memref<128x192xf32, #tpu.memory_space<vmem>>, %arg2: memref<192x128xf32, #tpu.memory_space<vmem>>, %arg3: memref<1x192xf32, #tpu.memory_space<vmem>>, %arg4: memref<1x128xf32, #tpu.memory_space<vmem>>, %arg5: memref<8x128xf32, #tpu.memory_space<vmem>>) attributes {dimension_semantics = [], scalar_prefetch = 0 : i64, scratch_operands = 0 : i64, tpu.core_type = #tpu.core_type<tc>} {
    %c0 = arith.constant 0 : index
    %c0_0 = arith.constant 0 : index
    %0 = vector.load %arg0[%c0, %c0_0] : memref<8x128xf32, #tpu.memory_space<vmem>>, vector<8x128xf32>
    %c0_1 = arith.constant 0 : index
    %c0_2 = arith.constant 0 : index
    %1 = vector.load %arg1[%c0_1, %c0_2] : memref<128x192xf32, #tpu.memory_space<vmem>>, vector<128x192xf32>
    %cst = arith.constant dense<0.000000e+00> : vector<8x192xf32>
    %2 = tpu.matmul %0, %1, %cst {dimension_numbers = #tpu.dot_dimension_numbers<[1], [0], [0], [1], [0, 0, 1, 1], [], []>} : vector<8x128xf32>, vector<128x192xf32>, vector<8x192xf32> -> vector<8x192xf32>
    %c0_3 = arith.constant 0 : index
    %c0_4 = arith.constant 0 : index
    %3 = vector.load %arg3[%c0_3, %c0_4] : memref<1x192xf32, #tpu.memory_space<vmem>>, vector<1x192xf32>
    %4 = vector.broadcast %3 : vector<1x192xf32> to vector<8x192xf32>
    %5 = arith.addf %2, %4 : vector<8x192xf32>
    %6 = math.tanh %5 : vector<8x192xf32>
    %c0_5 = arith.constant 0 : index
    %c0_6 = arith.constant 0 : index
    %7 = vector.load %arg2[%c0_5, %c0_6] : memref<192x128xf32, #tpu.memory_space<vmem>>, vector<192x128xf32>
    %cst_7 = arith.constant dense<0.000000e+00> : vector<8x128xf32>
    %8 = tpu.matmul %6, %7, %cst_7 {dimension_numbers = #tpu.dot_dimension_numbers<[1], [0], [0], [1], [0, 0, 1, 1], [], []>} : vector<8x192xf32>, vector<192x128xf32>, vector<8x128xf32> -> vector<8x128xf32>
    %c0_8 = arith.constant 0 : index
    %c0_9 = arith.constant 0 : index
    %9 = vector.load %arg4[%c0_8, %c0_9] : memref<1x128xf32, #tpu.memory_space<vmem>>, vector<1x128xf32>
    %10 = vector.broadcast %9 : vector<1x128xf32> to vector<8x128xf32>
    %11 = arith.addf %8, %10 : vector<8x128xf32>
    %c0_10 = arith.constant 0 : index
    %c0_11 = arith.constant 0 : index
    %12 = vector.load %arg5[%c0_10, %c0_11] : memref<8x128xf32, #tpu.memory_space<vmem>>, vector<8x128xf32>
    tpu.vector_store %arg5[%c0_10, %c0_11], %11 {strides = array<i32>} : memref<8x128xf32, #tpu.memory_space<vmem>>, vector<8x128xf32>,
    return
  }
}

</mosaic_0001>

<bundles_post_ra>
// kernel: _forward_impl.1
= control target key start
LH: loop header
LB: loop body
LE: loop exit
PB: predicated region body
PF: predicated region fallthrough
CT: control target
= control target key end

     0   :  { %v360_v7 = vmov 0.0   ;;  %v361_v8 = vmov 0.0|0.0   ;;  %s594_s0 = inlined_call_operand.vmem [shape: f32[8,128], index: 0, kind: input, shape index: {}]   ;;  %s595_s1 = inlined_call_operand.vmem [shape: f32[128,192], index: 1, kind: input, shape index: {}]   ;;  %s596_s2 = inlined_call_operand.vmem [shape: f32[192,128], index: 2, kind: input, shape index: {}]   ;;  %s597_s3 = inlined_call_operand.vmem [shape: f32[1,192], index: 3, kind: input, shape index: {}]   ;;  %s598_s4 = inlined_call_operand.vmem [shape: f32[1,128], index: 4, kind: input, shape index: {}]   ;;  %s599_s5 = inlined_call_operand.hbm [shape: f32[8,128], index: 5, kind: output, shape index: {}]  }
   0x1   :  { %v23_v0 = vld [vmem:[%s595_s1 + $0x8] sm:$0xff]  ;;  %v25_v1 = vld [vmem:[%s595_s1 + $0x18] sm:$0xff]  ;;  %v22_v2 = vld [vmem:[%s595_s1] sm:$0xff]  ;;  %130 = vmatprep.mubr.f32.mxu0 %v360_v7  ;;  %293 = vmatprep.subr.bf16.mxu1 %v361_v8 }
   0x2   :  { %v261_v3 = vpack.c.bf16 %v25_v1, %v23_v0  ;;  %v24_v4 = vld [vmem:[%s595_s1 + $0x10] sm:$0xff]  ;;  %v27_v5 = vld [vmem:[%s595_s1 + $0x28] sm:$0xff]  ;;  %v29_v6 = vld [vmem:[%s595_s1 + $0x38] sm:$0xff] }
   0x3   :  { %v263_v9 = vpack.c.bf16 %v24_v4, %v22_v2  ;;  %v265_v10 = vpack.c.bf16 %v29_v6, %v27_v5  ;;  %v26_v11 = vld [vmem:[%s595_s1 + $0x20] sm:$0xff]  ;;  %v28_v12 = vld [vmem:[%s595_s1 + $0x30] sm:$0xff]  ;;  %v31_v13 = vld [vmem:[%s595_s1 + $0x48] sm:$0xff] }
   0x4   :  { %262 = vmatprep.subr.bf16.mxu0 %v261_v3  ;;  %v33_v14 = vld [vmem:[%s595_s1 + $0x58] sm:$0xff]  ;;  %v267_v15 = vpack.c.bf16 %v28_v12, %v26_v11  ;;  %v30_v17 = vld [vmem:[%s595_s1 + $0x40] sm:$0xff]  ;;  %v32_v18 = vld [vmem:[%s595_s1 + $0x50] sm:$0xff] }
   0x5   :  { %264 = vmatpush1.bf16.msra.mxu0 %v263_v9  ;;  %v269_v16 = vpack.c.bf16 %v33_v14, %v31_v13  ;;  %v35_v19 = vld [vmem:[%s595_s1 + $0x68] sm:$0xff]  ;;  %v37_v20 = vld [vmem:[%s595_s1 + $0x78] sm:$0xff]  ;;  %v271_v21 = vpack.c.bf16 %v32_v18, %v30_v17  ;;  %v34_v23 = vld [vmem:[%s595_s1 + $0x60] sm:$0xff] }
   0x6   :  { %266 = vmatprep.subr.bf16.mxu0 %v265_v10  ;;  %v273_v22 = vpack.c.bf16 %v37_v20, %v35_v19  ;;  %v36_v24 = vld [vmem:[%s595_s1 + $0x70] sm:$0xff]  ;;  %v39_v25 = vld [vmem:[%s595_s1 + $0x88] sm:$0xff]  ;;  %v41_v26 = vld [vmem:[%s595_s1 + $0x98] sm:$0xff] }
   0x7   :  { %v139_v27 = vld [vmem:[%s596_s2] sm:$0xff]  ;;  %v140_v28 = vld [vmem:[%s596_s2 + $0x8] sm:$0xff]  ;;  %v141_v29 = vld [vmem:[%s596_s2 + $0x10] sm:$0xff]  ;;  %v275_v30 = vpack.c.bf16 %v36_v24, %v34_v23  ;;  %v277_v33 = vpack.c.bf16 %v41_v26, %v39_v25 }
   0x8   :  { %v294_v31 = vpack.c.bf16 %v140_v28, %v139_v27  ;;  %v142_v32 = vld [vmem:[%s596_s2 + $0x18] sm:$0xff]  ;;  %v38_v34 = vld [vmem:[%s595_s1 + $0x80] sm:$0xff]  ;;  %v40_v35 = vld [vmem:[%s595_s1 + $0x90] sm:$0xff] }
   0x9   :  { %268 = vmatpush1.bf16.msra.mxu0 %v267_v15  ;;  %v43_v36 = vld [vmem:[%s595_s1 + $0xa8] sm:$0xff]  ;;  %v45_v37 = vld [vmem:[%s595_s1 + $0xb8] sm:$0xff]  ;;  %v297_v38 = vpack.c.bf16 %v142_v32, %v141_v29  ;;  %v143_v39 = vld [vmem:[%s596_s2 + $0x20] sm:$0xff]  ;;  %v279_v41 = vpack.c.bf16 %v40_v35, %v38_v34 }
   0xa   :  { %270 = vmatprep.subr.bf16.mxu0 %v269_v16  ;;  %295 = vmatpush1.bf16.msra.mxu1 %v294_v31  ;;  %v144_v40 = vld [vmem:[%s596_s2 + $0x28] sm:$0xff] }
   0xb   :  { %296 = vmatprep.subr.bf16.mxu1 %v361_v8 }
   0xd   :  { %272 = vmatpush1.bf16.msra.mxu0 %v271_v21 }
   0xe   :  { %274 = vmatprep.subr.bf16.mxu0 %v273_v22 }
  0x11   :  { %276 = vmatpush1.bf16.msra.mxu0 %v275_v30 }
  0x12   :  { %10 = vsyncpa [#allocation3], 0  ;;  %278 = vmatprep.subr.bf16.mxu0 %v277_v33  ;;  %v281_v42 = vpack.c.bf16 %v45_v37, %v43_v36  ;;  %v42_v43 = vld [vmem:[%s595_s1 + $0xa0] sm:$0xff]  ;;  %v44_v44 = vld [vmem:[%s595_s1 + $0xb0] sm:$0xff]  ;;  %298 = vmatpush1.bf16.msra.mxu1 %v297_v38  ;;  %v300_v47 = vpack.c.bf16 %v144_v40, %v143_v39  ;;  %v56_v24 = vlaneseq  ;;  %vm170_vm0 = vcmask 523264   ;;  %s362_s7 = smov [#allocation2]  }
  0x13   :  { %v47_v45 = vld [vmem:[%s595_s1 + $0xc8] sm:$0xff]  ;;  %v49_v46 = vld [vmem:[%s595_s1 + $0xd8] sm:$0xff]  ;;  %299 = vmatprep.subr.bf16.mxu1 %v361_v8  ;;  %v145_v48 = vld [vmem:[%s596_s2 + $0x30] sm:$0xff]  ;;  %v283_v50 = vpack.c.bf16 %v44_v44, %v42_v43 }
  0x14   :  { %v146_v49 = vld [vmem:[%s596_s2 + $0x38] sm:$0xff]  ;;  %v285_v51 = vpack.c.bf16 %v49_v46, %v47_v45  ;;  %v46_v52 = vld [vmem:[%s595_s1 + $0xc0] sm:$0xff]  ;;  %v48_v53 = vld [vmem:[%s595_s1 + $0xd0] sm:$0xff]  ;;  %v57_v25 = vshrl.u32 %v56_v24, 7 }
  0x15   :  { %280 = vmatpush1.bf16.msra.mxu0 %v279_v41  ;;  %v51_v54 = vld [vmem:[%s595_s1 + $0xe8] sm:$0xff]  ;;  %v53_v55 = vld [vmem:[%s595_s1 + $0xf8] sm:$0xff]  ;;  %v303_v56 = vpack.c.bf16 %v146_v49, %v145_v48  ;;  %v147_v57 = vld [vmem:[%s596_s2 + $0x40] sm:$0xff]  ;;  %v287_v59 = vpack.c.bf16 %v48_v53, %v46_v52 }
  0x16   :  { %282 = vmatprep.subr.bf16.mxu0 %v281_v42  ;;  %301 = vmatpush1.bf16.msra.mxu1 %v300_v47  ;;  %v148_v58 = vld [vmem:[%s596_s2 + $0x48] sm:$0xff]  ;;  %v289_v60 = vpack.c.bf16 %v53_v55, %v51_v54  ;;  %v50_v61 = vld [vmem:[%s595_s1 + $0xe0] sm:$0xff]  ;;  %v52_v62 = vld [vmem:[%s595_s1 + $0xf0] sm:$0xff]  ;;  %v58_v26 = vsub.s32 0, %v57_v25  ;;  %v62_v28 = vsub.s32 1, %v57_v25 }
  0x17   :  { %302 = vmatprep.subr.bf16.mxu1 %v361_v8  ;;  %v306_v63 = vpack.c.bf16 %v148_v58, %v147_v57  ;;  %v149_v0 = vld [vmem:[%s596_s2 + $0x50] sm:$0xff]  ;;  %v150_v1 = vld [vmem:[%s596_s2 + $0x58] sm:$0xff]  ;;  %v291_v2 = vpack.c.bf16 %v52_v62, %v50_v61  ;;  %v151_v4 = vld [vmem:[%s596_s2 + $0x60] sm:$0xff] }
  0x18   :  { %v309_v3 = vpack.c.bf16 %v150_v1, %v149_v0  ;;  %v152_v5 = vld [vmem:[%s596_s2 + $0x68] sm:$0xff]  ;;  %v21_v6 = vld [vmem:[%s594_s0] sm:$0xff]  ;;  %v153_v9 = vld [vmem:[%s596_s2 + $0x70] sm:$0xff] }
  0x19   :  { %284 = vmatpush1.bf16.msra.mxu0 %v283_v50  ;;  %v312_v7 = vpack.c.bf16 %v152_v5, %v151_v4  ;;  %v154_v10 = vld [vmem:[%s596_s2 + $0x78] sm:$0xff]  ;;  %v155_v12 = vld [vmem:[%s596_s2 + $0x80] sm:$0xff]  ;;  %v156_v13 = vld [vmem:[%s596_s2 + $0x88] sm:$0xff] }
  0x1a   :  { %286 = vmatprep.subr.bf16.mxu0 %v285_v51  ;;  %304 = vmatpush1.bf16.msra.mxu1 %v303_v56  ;;  %v315_v11 = vpack.c.bf16 %v154_v10, %v153_v9  ;;  %v318_v14 = vpack.c.bf16 %v156_v13, %v155_v12  ;;  %v157_v15 = vld [vmem:[%s596_s2 + $0x90] sm:$0xff]  ;;  %v158_v16 = vld [vmem:[%s596_s2 + $0x98] sm:$0xff]  ;;  %v159_v18 = vld [vmem:[%s596_s2 + $0xa0] sm:$0xff] }
  0x1b   :  { %305 = vmatprep.subr.bf16.mxu1 %v361_v8  ;;  %v321_v17 = vpack.c.bf16 %v158_v16, %v157_v15  ;;  %v160_v19 = vld [vmem:[%s596_s2 + $0xa8] sm:$0xff]  ;;  %v161_v21 = vld [vmem:[%s596_s2 + $0xb0] sm:$0xff]  ;;  %v162_v22 = vld [vmem:[%s596_s2 + $0xb8] sm:$0xff] }
  0x1c   :  { %v324_v20 = vpack.c.bf16 %v160_v19, %v159_v18  ;;  %v327_v23 = vpack.c.bf16 %v162_v22, %v161_v21  ;;  %v54_v27 = vld [vmem:[%s597_s3] sm:$0x3]  ;;  %s251_s3 = sshll.u32 %s362_s7, 4  ;;  %s252_s3 = int_to_ptr.vmem [resolvable:$true] %s251_s3 }
  0x1d   :  { %288 = vmatpush1.bf16.msra.mxu0 %v287_v59  ;;  %v59_v29 = vrot.slane %v54_v27, %v58_v26  ;;  %v63_v30 = vrot.slane %v54_v27, %v62_v28  ;;  %v259_v36 = vld [vmem:[%s598_s4] ss:$0 sm:$0xff]  ;;  %s336_s8 = scalar_lea.vmem %s252_s3, 128  ;;  %p341_p1 = scmp.lt.s32.totalorder %s252_s3, %s252_s3 }
  0x1e   :  { %290 = vmatprep.subr.bf16.mxu0 %v289_v60  ;;  %307 = vmatpush1.bf16.msra.mxu1 %v306_v63  ;;  %p337_p0 = scmp.ne.s32.totalorder %s252_s3, %s336_s8  ;;  %p342_p2 = scmp.lt.s32.totalorder %s336_s8, %s336_s8 }
  0x1f   :  { %308 = vmatprep.subr.bf16.mxu1 %v361_v8 }
  0x20   :  { %p343_p3 = por %p342_p2, %p341_p1 }
  0x21   :  { %292 = vmatpush1.bf16.msra.mxu0 %v291_v2 }
  0x22   :  { %310 = vmatpush1.bf16.msra.mxu1 %v309_v3  ;;  %p344_p4 = pnand %p343_p3, %p337_p0 }
  0x23   :  { %311 = vmatprep.subr.bf16.mxu1 %v361_v8 }
  0x24   :  { %131 = vmatmul.mubr.f32.vlgmr.msra.gmra.mrb[0].mxu0 %v21_v6 }
  0x26   :  { %313 = vmatpush1.bf16.msra.mxu1 %v312_v7 }
  0x27   :  { %314 = vmatprep.subr.bf16.mxu1 %v361_v8 }
  0x2a   :  { %316 = vmatpush1.bf16.msra.mxu1 %v315_v11 }
  0x2b   :  { %317 = vmatprep.subr.bf16.mxu1 %v361_v8 }
  0x2e   :  { %319 = vmatpush1.bf16.msra.mxu1 %v318_v14 }
  0x2f   :  { %320 = vmatprep.subr.bf16.mxu1 %v361_v8 }
  0x32   :  { %322 = vmatpush1.bf16.msra.mxu1 %v321_v17 }
  0x33   :  { %323 = vmatprep.subr.bf16.mxu1 %v361_v8 }
  0x36   :  { %325 = vmatpush1.bf16.msra.mxu1 %v324_v20 }
  0x37   :  { %326 = vmatprep.subr.bf16.mxu1 %v361_v8 }
  0x3a   :  { %328 = vmatpush1.bf16.msra.mxu1 %v327_v23 }
  0xf7   :  { %v132_v31 = vpop.f32.mrb[0].mxu0 }
  0xf8   :  { %v133_v32 = vadd.f32 %v132_v31, %v59_v29  ;;  %v134_v33 = vpop.f32.mrb[1].mxu0 }
  0xf9   :  { %v135_v34 = vadd.f32 %v134_v33, %v63_v30 }
  0xfb   :  { %332 = vtanh.f32 %v135_v34 }
  0xfc   :  { %334 = vtanh.f32 %v133_v32 }
 0x105   :  { %v333_v35 = vpop.eup %332 }
 0x106   :  { %v335_v8 = vpop.eup %334  ;;  %260 = vmatprep.mubr.msk.f32.mxu1 %vm170_vm0, %v333_v35 }
 0x107   :  { %239 = vmatmul.mubr.f32.vlgmr.msra.gmra.mrb[0].mxu1 %v335_v8 }
 0x1da   :  { %v240_v37 = vpop.f32.mrb[0].mxu1 }
 0x1db   :  { %v241_v38 = vadd.f32 %v259_v36, %v240_v37  ;;  %v242_v39 = vpop.f32.mrb[1].mxu1 }
 0x1dd   :  { %244 = vst [vmem:[#allocation2] sm:$0xff] %v241_v38 }
 0x1de   :  { %347 = shalt.err (!%p344_p4)
}
 0x1df   :  { %s348_s11 = scalar_lea.hbm %s599_s5, 128 }
 0x1e0   :  { %p349_p5 = scmp.ne.s32.totalorder %s599_s5, %s348_s11  ;;  %p352_p6 = scmp.lt.u32.totalorder %s348_s11, %s599_s5 }
 0x1e2   :  { %p354_p7 = pnand %p352_p6, %p349_p5 }
 0x1e4   :  { %357 = shalt.err (!%p354_p7)
}
 0x1e5   :  { %254 = dma.vmem_to_hbm [thread:$0]  %s252_s3, 128, %s599_s5, [#allocation3]  }
 0x1e6   :  { %358 = dma.done.wait [#allocation3], 128  }
 0x1e7   :  { %359 = vsyncadd [#allocation3], 4294967168 }
 0x1e8   :  { %258 = vsyncpa [#allocation3], 1 }

</bundles_post_ra>
